<compile_context>
chip_gen: v6e
topology: v6e:2x2x1
jax: 0.10.0
libtpu: 0.0.40
codegen_flags: <defaults>
</compile_context>

<pallas_src>
import functools

import jax
import jax.numpy as jnp
from jax.experimental import pallas as pl
from jax.experimental.pallas import tpu as pltpu


def _vmem_capacity_bytes():
    """Best-effort per-core VMEM capacity; conservative (v7x) fallback."""
    try:
        info = pltpu.get_tpu_info()
        cap = getattr(info, "vmem_capacity_bytes", None)
        if cap:
            return int(cap)
    except Exception:
        pass
    return 64 << 20


def _pick_tb(b, bytes_per_b, budget):
    """Largest divisor of b that fits the budget; prefer >=2 batch tiles."""
    divs = [d for d in range(1, b + 1) if b % d == 0]
    max_tb = max(1, budget // max(1, bytes_per_b))
    fit = [d for d in divs if d <= max_tb] or [1]
    if b >= 2:
        two_tiles = [d for d in fit if (b // d) >= 2]
        if two_tiles:
            return max(two_tiles)
    return max(fit)


def _channel_attention_kernel(x_ref, w1t_ref, w2t_ref, o_ref, acc_ref,
                              *, hw, chunk, tb, masked):
    # x_ref  : (tb, C, chunk)  one spatial chunk of tb batch elements
    # w1t_ref: (C, Cr)  W1^T (f32) ; w2t_ref: (Cr, C)  W2^T (f32)
    # o_ref  : (tb, 1, C)  sigmoid(channel attention), f32
    # acc_ref: (2*tb, C) f32 scratch: rows [:tb] running max, rows [tb:]
    #          running mean (accumulated pre-scaled by 1/(H*W)).
    s = pl.program_id(1)
    n_s = pl.num_programs(1)
    c = acc_ref.shape[1]

    @pl.when(s == 0)
    def _():
        acc_ref[:tb, :] = jnp.full((tb, c), -jnp.inf, dtype=jnp.float32)
        acc_ref[tb:, :] = jnp.zeros((tb, c), dtype=jnp.float32)

    x = x_ref[...]                                        # native dtype
    if masked:
        # Ragged last spatial chunk: lanes >= remaining are garbage padding.
        lane = jax.lax.broadcasted_iota(jnp.int32, x.shape, dimension=2)
        valid = hw - s * chunk
        m = lane < valid
        if jnp.issubdtype(x.dtype, jnp.floating):
            fill_max = jnp.asarray(-jnp.inf, dtype=x.dtype)
        else:
            fill_max = jnp.asarray(jnp.iinfo(x.dtype).min, dtype=x.dtype)
        x_for_max = jnp.where(m, x, fill_max)
        x_for_sum = jnp.where(m, x, jnp.zeros((), dtype=x.dtype))
    else:
        x_for_max = x
        x_for_sum = x

    chunk_max = jnp.max(x_for_max, axis=-1).astype(jnp.float32)        # (tb, C)
    chunk_mean = jnp.sum(x_for_sum, axis=-1, dtype=jnp.float32) * (1.0 / hw)

    acc_ref[:tb, :] = jnp.maximum(acc_ref[:tb, :], chunk_max)
    acc_ref[tb:, :] = acc_ref[tb:, :] + chunk_mean

    @pl.when(s == n_s - 1)
    def _():
        p = acc_ref[...]                                   # (2*tb, C) max|mean
        h = jnp.maximum(
            jnp.dot(p, w1t_ref[...], preferred_element_type=jnp.float32), 0.0)
        y = jnp.dot(h, w2t_ref[...], preferred_element_type=jnp.float32)
        out = jax.nn.sigmoid(y[:tb] + y[tb:])              # (tb, C)
        o_ref[...] = out.astype(o_ref.dtype)[:, None, :]


def channel_attention(x, w1, w2):
    """x: (B, C, H, W); w1: (C//r, C); w2: (C, C//r) -> (B, C, 1, 1) f32."""
    B, C, H, W = x.shape
    Cr = w1.shape[0]
    HW = H * W

    # Lane-dense layout: reduce over H*W on the 128-lane axis.
    x3 = x.reshape(B, C, HW)
    itemsize = jnp.dtype(x3.dtype).itemsize

    cap = _vmem_capacity_bytes()
    budget = (32 << 20) if cap >= (96 << 20) else (12 << 20)

    bytes_per_b = C * HW * itemsize
    if bytes_per_b <= budget:
        # One contiguous (C, H*W) slab per batch element; grow along batch.
        chunk = HW
        n_s = 1
        masked = False
        tb = _pick_tb(B, bytes_per_b, budget)
    else:
        # Single batch element exceeds the budget: chunk the spatial axis.
        tb = 1
        chunk = max(128, (budget // (C * itemsize)) // 128 * 128)
        if chunk >= HW:
            chunk = HW
            n_s = 1
            masked = False
        else:
            n_s = -(-HW // chunk)
            masked = (HW % chunk) != 0

    # Pre-transpose + pre-cast weights once in the wrapper (free plumbing).
    w1t = jnp.asarray(w1, jnp.float32).T                   # (C, Cr)
    w2t = jnp.asarray(w2, jnp.float32).T                   # (Cr, C)

    # VMEM accounting: input double-buffered; weights/output/scratch tiny.
    block_bytes = tb * C * chunk * itemsize
    w_bytes = 2 * (C * Cr * 4)
    out_bytes = tb * C * 4
    scratch_bytes = 2 * tb * C * 4
    need = 2 * block_bytes + 2 * w_bytes + 2 * out_bytes + scratch_bytes + (4 << 20)
    vmem_limit = int(min(cap - (8 << 20), max(need, 32 << 20)))

    kernel = functools.partial(_channel_attention_kernel,
                               hw=HW, chunk=chunk, tb=tb, masked=masked)

    cost = pl.CostEstimate(
        flops=2 * B * C * HW + 2 * 2 * (2 * B) * C * Cr,
        transcendentals=B * C,
        bytes_accessed=B * C * HW * itemsize + w_bytes + B * C * 4,
    )

    out3 = pl.pallas_call(
        kernel,
        out_shape=jax.ShapeDtypeStruct((B, 1, C), jnp.float32),
        grid_spec=pltpu.PrefetchScalarGridSpec(
            num_scalar_prefetch=0,
            grid=(B // tb, n_s),
            in_specs=[
                pl.BlockSpec((tb, C, chunk), lambda b, s: (b, 0, s)),
                pl.BlockSpec((C, Cr), lambda b, s: (0, 0)),
                pl.BlockSpec((Cr, C), lambda b, s: (0, 0)),
            ],
            out_specs=pl.BlockSpec((tb, 1, C), lambda b, s: (b, 0, 0)),
            scratch_shapes=[pltpu.VMEM((2 * tb, C), jnp.float32)],
        ),
        compiler_params=pltpu.CompilerParams(
            dimension_semantics=("parallel", "arbitrary"),
            vmem_limit_bytes=vmem_limit,
        ),
        cost_estimate=cost,
    )(x3, w1t, w2t)

    return out3.reshape(B, C, 1, 1)


def channel_attention_ref(x, w1, w2):
    """Pure-JAX reference replicating the PyTorch forward."""
    xf = x.astype(jnp.float32)
    max_v = jnp.max(xf, axis=(2, 3))                 # (B, C)
    avg_v = jnp.mean(xf, axis=(2, 3))                # (B, C)

    def se(v):
        h = jnp.maximum(v @ w1.T, 0.0)
        return h @ w2.T

    out = jax.nn.sigmoid(se(max_v) + se(avg_v))
    return out[:, :, None, None]


if __name__ == "__main__":
    # Small but valid shapes: channels must be >= reduction (default 16).
    B, C, H, W = 2, 64, 16, 16
    reduction = 16
    Cr = C // reduction

    key = jax.random.PRNGKey(0)
    kx, k1, k2 = jax.random.split(key, 3)

    x = jax.random.normal(kx, (B, C, H, W), dtype=jnp.float32)
    # Deterministic weight init (stand-in for Conv2d kaiming-uniform init).
    w1 = jax.random.normal(k1, (Cr, C), dtype=jnp.float32) * (1.0 / C) ** 0.5
    w2 = jax.random.normal(k2, (C, Cr), dtype=jnp.float32) * (1.0 / Cr) ** 0.5

    out = channel_attention(x, w1, w2)
    out = jax.block_until_ready(out)

    ref = channel_attention_ref(x, w1, w2)
    assert out.shape == (B, C, 1, 1), out.shape
    assert jnp.allclose(out, ref, atol=1e-5, rtol=1e-5), (
        float(jnp.max(jnp.abs(out - ref))))

    print("KERNEL_OK")
</pallas_src>

<mosaic_0001>
module attributes {stable_mosaic.version = 11 : i64} {
  func.func @_channel_attention_kernel(%arg0: i32, %arg1: i32, %arg2: memref<1x64x256xf32, #tpu.memory_space<vmem>>, %arg3: memref<64x4xf32, #tpu.memory_space<vmem>>, %arg4: memref<4x64xf32, #tpu.memory_space<vmem>>, %arg5: memref<1x1x64xf32, #tpu.memory_space<vmem>>, %arg6: memref<2x64xf32, #tpu.memory_space<vmem>>) attributes {dimension_semantics = [#tpu.dimension_semantics<parallel>, #tpu.dimension_semantics<arbitrary>], iteration_bounds = array<i64: 2, 1>, scalar_prefetch = 0 : i64, scratch_operands = 1 : i64, tpu.core_type = #tpu.core_type<tc>, window_params = [{transform_indices = @transform_0, window_bounds = array<i64: 1, 64, 256>}, {pipeline_mode = #tpu.pipeline_mode<synchronous>, transform_indices = @transform_1, window_bounds = array<i64: 64, 4>}, {pipeline_mode = #tpu.pipeline_mode<synchronous>, transform_indices = @transform_2, window_bounds = array<i64: 4, 64>}, {transform_indices = @transform_3, window_bounds = array<i64: 1, 1, 64>}]} {
    %c0_i32 = arith.constant 0 : i32
    %0 = arith.cmpi eq, %arg1, %c0_i32 : i32
    %1 = arith.extui %0 : i1 to i32
    %c0_i32_0 = arith.constant 0 : i32
    %2 = arith.cmpi ne, %1, %c0_i32_0 : i32
    scf.if %2 {
      %cst_14 = arith.constant 0xFF800000 : f32
      %17 = vector.broadcast %cst_14 : f32 to vector<1x64xf32>
      %c0_15 = arith.constant 0 : index
      %c0_16 = arith.constant 0 : index
      %18 = vector.load %arg6[%c0_15, %c0_16] : memref<2x64xf32, #tpu.memory_space<vmem>>, vector<1x64xf32>
      tpu.vector_store %arg6[%c0_15, %c0_16], %17 {strides = array<i32>} : memref<2x64xf32, #tpu.memory_space<vmem>>, vector<1x64xf32>,
      %cst_17 = arith.constant 0.000000e+00 : f32
      %19 = vector.broadcast %cst_17 : f32 to vector<1x64xf32>
      %c1_18 = arith.constant 1 : index
      %c0_19 = arith.constant 0 : index
      %20 = vector.load %arg6[%c1_18, %c0_19] : memref<2x64xf32, #tpu.memory_space<vmem>>, vector<1x64xf32>
      tpu.vector_store %arg6[%c1_18, %c0_19], %19 {strides = array<i32>} : memref<2x64xf32, #tpu.memory_space<vmem>>, vector<1x64xf32>,
    } else {
    }
    %c0 = arith.constant 0 : index
    %c0_1 = arith.constant 0 : index
    %c0_2 = arith.constant 0 : index
    %3 = vector.load %arg2[%c0, %c0_1, %c0_2] : memref<1x64x256xf32, #tpu.memory_space<vmem>>, vector<1x64x256xf32>
    %cst = arith.constant dense<0xFF800000> : vector<1x64xf32>
    %4 = vector.multi_reduction <maximumf>, %3, %cst [2] : vector<1x64x256xf32> to vector<1x64xf32>
    %cst_3 = arith.constant dense<0.000000e+00> : vector<1x64xf32>
    %5 = vector.multi_reduction <add>, %3, %cst_3 [2] : vector<1x64x256xf32> to vector<1x64xf32>
    %cst_4 = arith.constant 3.906250e-03 : f32
    %6 = vector.broadcast %cst_4 : f32 to vector<1x64xf32>
    %7 = arith.mulf %5, %6 : vector<1x64xf32>
    %c0_5 = arith.constant 0 : index
    %c0_6 = arith.constant 0 : index
    %8 = vector.load %arg6[%c0_5, %c0_6] : memref<2x64xf32, #tpu.memory_space<vmem>>, vector<1x64xf32>
    %9 = arith.maximumf %8, %4 : vector<1x64xf32>
    %c0_7 = arith.constant 0 : index
    %c0_8 = arith.constant 0 : index
    %10 = vector.load %arg6[%c0_7, %c0_8] : memref<2x64xf32, #tpu.memory_space<vmem>>, vector<1x64xf32>
    tpu.vector_store %arg6[%c0_7, %c0_8], %9 {strides = array<i32>} : memref<2x64xf32, #tpu.memory_space<vmem>>, vector<1x64xf32>,
    %c1 = arith.constant 1 : index
    %c0_9 = arith.constant 0 : index
    %11 = vector.load %arg6[%c1, %c0_9] : memref<2x64xf32, #tpu.memory_space<vmem>>, vector<1x64xf32>
    %12 = arith.addf %11, %7 : vector<1x64xf32>
    %c1_10 = arith.constant 1 : index
    %c0_11 = arith.constant 0 : index
    %13 = vector.load %arg6[%c1_10, %c0_11] : memref<2x64xf32, #tpu.memory_space<vmem>>, vector<1x64xf32>
    tpu.vector_store %arg6[%c1_10, %c0_11], %12 {strides = array<i32>} : memref<2x64xf32, #tpu.memory_space<vmem>>, vector<1x64xf32>,
    %c0_i32_12 = arith.constant 0 : i32
    %14 = arith.cmpi eq, %arg1, %c0_i32_12 : i32
    %15 = arith.extui %14 : i1 to i32
    %c0_i32_13 = arith.constant 0 : i32
    %16 = arith.cmpi ne, %15, %c0_i32_13 : i32
    scf.if %16 {
      %c0_14 = arith.constant 0 : index
      %c0_15 = arith.constant 0 : index
      %17 = vector.load %arg6[%c0_14, %c0_15] : memref<2x64xf32, #tpu.memory_space<vmem>>, vector<2x64xf32>
      %c0_16 = arith.constant 0 : index
      %c0_17 = arith.constant 0 : index
      %18 = vector.load %arg3[%c0_16, %c0_17] : memref<64x4xf32, #tpu.memory_space<vmem>>, vector<64x4xf32>
      %cst_18 = arith.constant dense<0.000000e+00> : vector<2x4xf32>
      %19 = tpu.matmul %17, %18, %cst_18 {dimension_numbers = #tpu.dot_dimension_numbers<[1], [0], [0], [1], [0, 0, 1, 1], [], []>} : vector<2x64xf32>, vector<64x4xf32>, vector<2x4xf32> -> vector<2x4xf32>
      %cst_19 = arith.constant 0.000000e+00 : f32
      %20 = vector.broadcast %cst_19 : f32 to vector<2x4xf32>
      %21 = arith.maximumf %19, %20 : vector<2x4xf32>
      %c0_20 = arith.constant 0 : index
      %c0_21 = arith.constant 0 : index
      %22 = vector.load %arg4[%c0_20, %c0_21] : memref<4x64xf32, #tpu.memory_space<vmem>>, vector<4x64xf32>
      %cst_22 = arith.constant dense<0.000000e+00> : vector<2x64xf32>
      %23 = tpu.matmul %21, %22, %cst_22 {dimension_numbers = #tpu.dot_dimension_numbers<[1], [0], [0], [1], [0, 0, 1, 1], [], []>} : vector<2x4xf32>, vector<4x64xf32>, vector<2x64xf32> -> vector<2x64xf32>
      %24 = vector.extract_strided_slice %23 {offsets = [0, 0], sizes = [1, 64], strides = [1, 1]} : vector<2x64xf32> to vector<1x64xf32>
      %25 = vector.extract_strided_slice %23 {offsets = [1, 0], sizes = [1, 64], strides = [1, 1]} : vector<2x64xf32> to vector<1x64xf32>
      %26 = arith.addf %24, %25 : vector<1x64xf32>
      %27 = arith.negf %26 : vector<1x64xf32>
      %28 = math.exp %27 : vector<1x64xf32>
      %cst_23 = arith.constant 1.000000e+00 : f32
      %29 = vector.broadcast %cst_23 : f32 to vector<1x64xf32>
      %30 = arith.addf %29, %28 : vector<1x64xf32>
      %31 = arith.divf %29, %30 : vector<1x64xf32>
      %32 = vector.shape_cast %31 : vector<1x64xf32> to vector<1x1x64xf32>
      %c0_24 = arith.constant 0 : index
      %c0_25 = arith.constant 0 : index
      %c0_26 = arith.constant 0 : index
      %33 = vector.load %arg5[%c0_24, %c0_25, %c0_26] : memref<1x1x64xf32, #tpu.memory_space<vmem>>, vector<1x1x64xf32>
      tpu.vector_store %arg5[%c0_24, %c0_25, %c0_26], %32 {strides = array<i32>} : memref<1x1x64xf32, #tpu.memory_space<vmem>>, vector<1x1x64xf32>,
    } else {
    }
    return
  }
  func.func @transform_0(%arg0: i32, %arg1: i32) -> (i32, i32, i32) {
    %c0_i32 = arith.constant 0 : i32
    %c0_i32_0 = arith.constant 0 : i32
    return %arg0, %c0_i32, %arg1 : i32, i32, i32
  }
  func.func @transform_1(%arg0: i32, %arg1: i32) -> (i32, i32) {
    %c0_i32 = arith.constant 0 : i32
    %c0_i32_0 = arith.constant 0 : i32
    %c0_i32_1 = arith.constant 0 : i32
    return %c0_i32, %c0_i32_0 : i32, i32
  }
  func.func @transform_2(%arg0: i32, %arg1: i32) -> (i32, i32) {
    %c0_i32 = arith.constant 0 : i32
    %c0_i32_0 = arith.constant 0 : i32
    %c0_i32_1 = arith.constant 0 : i32
    return %c0_i32, %c0_i32_0 : i32, i32
  }
  func.func @transform_3(%arg0: i32, %arg1: i32) -> (i32, i32, i32) {
    %c0_i32 = arith.constant 0 : i32
    %c0_i32_0 = arith.constant 0 : i32
    %c0_i32_1 = arith.constant 0 : i32
    return %arg0, %c0_i32, %c0_i32_0 : i32, i32, i32
  }
}

</mosaic_0001>

<bundles_post_ra>
// kernel: tpu_custom_call.1
= control target key start
LH: loop header
LB: loop body
LE: loop exit
PB: predicated region body
PF: predicated region fallthrough
CT: control target
= control target key end

     0   :  { %8 = vsyncpa [#allocation4], 0  ;;  %s1133_s0 = inlined_call_operand.hbm [shape: f32[2,64,256], index: 0, kind: input, shape index: {}]   ;;  %s1134_s1 = inlined_call_operand.vmem [shape: f32[64,4], index: 1, kind: input, shape index: {}]   ;;  %s1135_s2 = inlined_call_operand.vmem [shape: f32[4,64], index: 2, kind: input, shape index: {}]   ;;  %s1136_s3 = inlined_call_operand.hbm [shape: f32[2,1,64], index: 3, kind: output, shape index: {}]  }
   0x1   :  { %10 = vsyncpa [#allocation4 + $0x1], 0 }
   0x2   :  { %11 = vsyncpa [#allocation5], 0 }
   0x3   :  { %13 = vsyncpa [#allocation5 + $0x1], 0  ;;  %s930_s12 = smov 0   ;;  %s932_s13 = smov 0  }
   0x4   :  { %s934_s14 = smov 0   ;;  %s936_s15 = smov 0  }
   0x5   :  { %s938_s16 = smov 0   ;;  %s940_s17 = smov 0  }
   0x6 LB: > { %s670_s18 = sadd.s32 4294967295, %s901_s17   ;;  %s671_s19 = sadd.s32 4294967294, %s901_s17   ;;  %s901_s17 = sphi %s940_s17, %s19_s17   ;;  %s897_s16 = sphi %s938_s16, %s1147_s16   ;;  %s893_s15 = sphi %s936_s15, %s1146_s15   ;;  %s889_s14 = sphi %s934_s14, %s1145_s14   ;;  %s885_s13 = sphi %s932_s13, %s1144_s13   ;;  %s881_s12 = sphi %s930_s12, %s1143_s12  }
   0x7   : > { %s31_s20 = sadd.s32 1, %s897_s16  ;;  %s40_s21 = sadd.s32 1, %s889_s14 }
   0x8   : > { %p33_p0 = scmp.ge.s32.totalorder %s31_s20, 2  ;;  %p47_p1 = scmp.ne.s32.totalorder %s889_s14, %s885_s13 }
   0x9   : > { %p48_p2 = scmp.eq.s32.totalorder %s901_s17, 0  ;;  %p53_p3 = scmp.ne.s32.totalorder %s885_s13, %s881_s12 }
   0xa   : > { %s1149_s20 = smov (%p33_p0, %s31_s20), 0  ;;  %p54_p5 = scmp.eq.s32.totalorder %s670_s18, 0 }
   0xb   : > { %p971_p4 = por %p48_p2, %p47_p1  ;;  %s35_s23 = ssub.s32 %s897_s16, %s1149_s20 }
   0xc   : > { %p119_p6 = scmp.eq.s32.totalorder %s670_s18, 1  ;;  %p38_p7 = scmp.eq.s32.totalorder %s35_s23, 0 }
   0xd   : > { %p977_p8 = por %p54_p5, %p53_p3  ;;  %p125_p10 = scmp.eq.s32.totalorder %s671_s19, 1 }
   0xe   : > { %p981_p9 = por %p119_p6, %p47_p1  ;;  %p734_p13 = scmp.lt.s32.totalorder %s901_s17, 2 }
   0xf   : > { %s986_s26 = scalar_select %p38_p7, %s889_s14, %s40_s21  }
  0x10   : > { %p988_p11 = por %p125_p10, %p53_p3  ;;  %s151_s28 = sand.u32 1, %s889_s14  }
  0x11   : > { %s674_s29 = sshll.u32 %s151_s28, 7  ;;  %s686_s30 = sshll.u32 %s897_s16, 11 }
  0x12   : > { %s163_s6 = scalar_lea.hbm %s1133_s0, %s686_s30  ;;  %s155_s7 = scalar_lea.vmem [#allocation3], %s674_s29 }
  0x13   : > { %s164_s8 = sshll.u32 %s155_s7, 4  ;;  %p1001_p0 = pnand %p734_p13, %p971_p4  ;;  %s165_s8 = int_to_ptr.vmem [resolvable:$true] %s164_s8 }
  0x14   : > { %p677_p1 = scmp.ge.s32.totalorder %s901_s17, 1  ;;  %s152_s10 = scalar_lea.sflag [#allocation4], %s151_s28 }
  0x15   : > { %p795_p2 = pneg %p1001_p0  ;;  %s806_s11 = scalar_lea.vmem %s165_s8, 2048 }
  0x16   : > { %p807_p3 = scmp.ne.s32.totalorder %s165_s8, %s806_s11  ;;  %s903_s18 = smov [#allocation3]  }
  0x17   : > { %s811_s19 = sshll.u32 %s903_s18, 4  ;;  %s812_s19 = int_to_ptr.vmem [resolvable:$false] %s811_s19 }
  0x18   : > { %p809_p5 = pnand %p807_p3, %p795_p2  ;;  %s813_s21 = scalar_lea.vmem %s812_s19, 4096 }
  0x19   : > { %p814_p7 = scmp.lt.s32.totalorder %s165_s8, %s812_s19  ;;  %p815_p10 = scmp.lt.s32.totalorder %s813_s21, %s806_s11 }
  0x1a   : > { %p810_p6 = pneg %p809_p5 }
  0x1b   : > { %p816_p12 = por %p815_p10, %p814_p7 }
  0x1d   : > { %p817_p4 = pnand %p816_p12, %p810_p6 }
  0x1f   : > { %820 = shalt.err (!%p817_p4)
}
  0x20   : > { %s904_s22 = smov 256   ;;  %s905_s23 = smov 16  }
  0x21   : > { %729 = dma.hbm_to_vmem [thread:$0]  (!%p1001_p0), %s163_s6, 2048, %s165_s8, %s152_s10, %s904_s22, %s904_s22, %s905_s23  }
  0x22   : > { %p172_p13 = scmp.lt.s32.totalorder %s901_s17, 3 }
  0x24   : > { %p173_p2 = pnand %p677_p1, %p172_p13 }
  0x25   : > { %s1014_s28 = sand.u32 (!%p173_p2), 1, %s885_s13  }
  0x26   : > { %176 = sbr.rel (%p173_p2) target bundleno = 665 (0x299), region = 32  ;;  %s678_s29 = sshll.u32 (!%p173_p2), %s1014_s28, 7 }
  0x27   : > { %s179_s30 = scalar_lea.sflag (!%p173_p2), [#allocation4], %s1014_s28  ;;  %s1018_s4 = scalar_lea.vmem (!%p173_p2), [#allocation3], %s678_s29 }
  0x2b   : > { %872 = dma.done.wait (%p977_p8), %s179_s30, 2048  }
  0x2c   : > { %874 = vsyncadd (%p977_p8), %s179_s30, 4294965248  ;;  %v216_v0 = vld [vmem:[%s1018_s4 + $0x20] sm:$0xff]  ;;  %v217_v1 = vld [vmem:[%s1018_s4 + $0x28] sm:$0xff]  ;;  %vm209_vm0 = vcmask 516096   ;;  %v906_v32 = vmov 0.0   ;;  %v907_v33 = vmov -inf   ;;  %v293_v44 = vlaneseq }
  0x2d   : > { %v212_v2 = vld [vmem:[%s1018_s4] sm:$0xff]  ;;  %v258_v3 = vadd.f32 %v217_v1, %v216_v0  ;;  %v213_v4 = vld [vmem:[%s1018_s4 + $0x8] sm:$0xff]  ;;  %v214_v5 = vld [vmem:[%s1018_s4 + $0x10] sm:$0xff]  ;;  %v234_v17 = vmax.f32 %v216_v0, %v217_v1  ;;  %211 = vst.msk [vmem:[#allocation2 + $0x1] sm:$0x1] %vm209_vm0, %v906_v32  ;;  %698 = vmatprep.subr.mxu0 %v906_v32  ;;  %717 = vmatprep.subr.mxu1 %v906_v32  ;;  %vm908_vm1 = vmmov 0  }
  0x2e   : > { %v215_v6 = vld [vmem:[%s1018_s4 + $0x18] sm:$0xff]  ;;  %v252_v7 = vadd.f32 %v213_v4, %v212_v2  ;;  %v228_v8 = vmax.f32 %v212_v2, %v213_v4  ;;  %v218_v10 = vld [vmem:[%s1018_s4 + $0x30] sm:$0xff]  ;;  %v220_v14 = vld [vmem:[%s1018_s4 + $0x40] sm:$0xff]  ;;  %210 = vst.msk [vmem:[#allocation2] sm:$0x1] %vm209_vm0, %v907_v33  ;;  %714 = vmatprep.mubr.msk.f32.mxu0 %vm908_vm1, %v906_v32  ;;  %719 = vmatprep.mubr.msk.f32.mxu1 %vm908_vm1, %v906_v32  ;;  %v294_v47 = vand.u32 127, %v293_v44 }
  0x2f   : > { %259 = vadd.xlane.f32.xlu1 %v258_v3  ;;  %v255_v9 = vadd.f32 %v215_v6, %v214_v5  ;;  %v219_v11 = vld [vmem:[%s1018_s4 + $0x38] sm:$0xff]  ;;  %v231_v13 = vmax.f32 %v214_v5, %v215_v6  ;;  %v221_v15 = vld [vmem:[%s1018_s4 + $0x48] sm:$0xff]  ;;  %v222_v18 = vld [vmem:[%s1018_s4 + $0x50] sm:$0xff]  ;;  %v296_v51 = vshrl.u32 %v293_v44, 7  ;;  %vm304_vm2 = vcmask 130112   ;;  %s683_s6 = sshll.u32 %s893_s15, 4 }
  0x30   : > { %253 = vadd.xlane.f32.xlu0 %v252_v7  ;;  %v261_v12 = vadd.f32 %v219_v11, %v218_v10  ;;  %v264_v16 = vadd.f32 %v221_v15, %v220_v14  ;;  %v223_v19 = vld [vmem:[%s1018_s4 + $0x58] sm:$0xff]  ;;  %v237_v21 = vmax.f32 %v218_v10, %v219_v11  ;;  %v224_v22 = vld [vmem:[%s1018_s4 + $0x60] sm:$0xff]  ;;  %v225_v23 = vld [vmem:[%s1018_s4 + $0x68] sm:$0xff]  ;;  %v240_v25 = vmax.f32 %v220_v14, %v221_v15  ;;  %s203_s7 = scalar_lea.vmem [#allocation6], %s1014_s28  ;;  %s1090_s11 = scalar_lea.hbm %s1136_s3, %s683_s6 }
  0x31   : > { %v267_v20 = vadd.f32 %v223_v19, %v222_v18  ;;  %v270_v24 = vadd.f32 %v225_v23, %v224_v22  ;;  %v226_v26 = vld [vmem:[%s1018_s4 + $0x70] sm:$0xff]  ;;  %v227_v27 = vld [vmem:[%s1018_s4 + $0x78] sm:$0xff]  ;;  %v243_v29 = vmax.f32 %v222_v18, %v223_v19  ;;  %v246_v31 = vmax.f32 %v224_v22, %v225_v23  ;;  %v412_v36 = vld [vmem:[%s1134_s1 + $0x28] sm:$0xff]  ;;  %s593_s8 = sshll.u32 %s203_s7, 4  ;;  %s581_s18 = scalar_lea.sflag [#allocation5], %s1014_s28  ;;  %s594_s8 = int_to_ptr.vmem [resolvable:$true] %s593_s8 }
  0x32   : > { %v273_v28 = vadd.f32 %v227_v27, %v226_v26  ;;  %v249_v30 = vmax.f32 %v226_v26, %v227_v27  ;;  %v414_v34 = vld [vmem:[%s1134_s1 + $0x38] sm:$0xff]  ;;  %v413_v35 = vld [vmem:[%s1134_s1 + $0x30] sm:$0xff]  ;;  %v411_v37 = vld [vmem:[%s1134_s1 + $0x20] sm:$0xff]  ;;  %v299_v49 = vadd.s32 4294967288, %v294_v47  ;;  %v306_v53 = vadd.s32 4294967280, %v294_v47  ;;  %s821_s19 = scalar_lea.vmem %s594_s8, 16 }
  0x33   : > { %229 = vmax.xlane.f32.xlu1 %v228_v8  ;;  %699 = vmatpush3.msra.mxu0 %v414_v34  ;;  %v410_v38 = vld [vmem:[%s1134_s1 + $0x18] sm:$0xff]  ;;  %v409_v39 = vld [vmem:[%s1134_s1 + $0x10] sm:$0xff]  ;;  %v408_v40 = vld [vmem:[%s1134_s1 + $0x8] sm:$0xff]  ;;  %v313_v56 = vadd.s32 4294967272, %v294_v47  ;;  %v320_v58 = vadd.s32 4294967264, %v294_v47  ;;  %v297_v59 = vsub.s32 %v294_v47, %v296_v51  ;;  %v327_v61 = vadd.s32 4294967256, %v294_v47  ;;  %p822_p8 = scmp.ne.s32.totalorder %s594_s8, %s821_s19 }
  0x34   : > { %256 = vadd.xlane.f32.xlu0 %v255_v9  ;;  %700 = vmatprep.subr.mxu0 %v906_v32  ;;  %v407_v41 = vld [vmem:[%s1134_s1] sm:$0xff]  ;;  %v302_v54 = vsub.s32 %v299_v49, %v296_v51  ;;  %v334_v63 = vadd.s32 4294967248, %v294_v47  ;;  %v309_v0 = vsub.s32 %v306_v53, %v296_v51  ;;  %v341_v11 = vadd.s32 4294967240, %v294_v47  ;;  %s909_s21 = smov [#allocation6]  }
  0x35   : > { %701 = vmatpush3.msra.mxu0 %v413_v35  ;;  %v316_v2 = vsub.s32 %v313_v56, %v296_v51  ;;  %v323_v6 = vsub.s32 %v320_v58, %v296_v51  ;;  %v330_v9 = vsub.s32 %v327_v61, %v296_v51  ;;  %vm311_vm3 = vcmask 195712   ;;  %p823_p12 = pnand %p822_p8, %p981_p9  ;;  %s825_s22 = sshll.u32 %s909_s21, 4  ;;  %s826_s22 = int_to_ptr.vmem [resolvable:$false] %s825_s22 }
  0x36   : > { %702 = vmatprep.subr.mxu0 %v906_v32  ;;  %vm318_vm4 = vcmask 261312   ;;  %vm325_vm5 = vcmask 326912   ;;  %vm332_vm6 = vcmask 392512   ;;  %v344_v22 = vsub.s32 %v341_v11, %v296_v51  ;;  %s827_s15 = scalar_lea.vmem %s826_s22, 32  ;;  %p828_p1 = scmp.lt.s32.totalorder %s594_s8, %s826_s22 }
  0x37   : > { %262 = vadd.xlane.f32.xlu1 %v261_v12  ;;  %703 = vmatpush3.msra.mxu0 %v412_v36  ;;  %v337_v12 = vsub.s32 %v334_v63, %v296_v51  ;;  %vm339_vm7 = vcmask 458112   ;;  %vm346_vm8 = vcmask 523712   ;;  %vm415_vm9 = vcmask 523264   ;;  %p824_p0 = pneg %p823_p12  ;;  %p829_p3 = scmp.lt.s32.totalorder %s827_s15, %s821_s19 }
  0x38   : > { %232 = vmax.xlane.f32.xlu0 %v231_v13  ;;  %704 = vmatprep.subr.mxu0 %v906_v32  ;;  %vm495_vm10 = vcmask 1043456   ;;  %vm491_vm11 = vcmask 31744  }
  0x39   : > { %705 = vmatpush3.msra.mxu0 %v411_v37  ;;  %v352_v37 = vld [vmem:[#allocation2 + $0x1] sm:$0x1]  ;;  %p830_p5 = por %p829_p3, %p828_p1 }
  0x3a   : > { %706 = vmatprep.subr.mxu0 %v906_v32 }
  0x3b   : > { %265 = vadd.xlane.f32.xlu1 %v264_v16  ;;  %707 = vmatpush3.msra.mxu0 %v410_v38  ;;  %p831_p6 = pnand %p830_p5, %p824_p0 }
  0x3c   : > { %235 = vmax.xlane.f32.xlu0 %v234_v17  ;;  %708 = vmatprep.subr.mxu0 %v906_v32 }
  0x3d   : > { %709 = vmatpush3.msra.mxu0 %v409_v39 }
  0x3e   : > { %710 = vmatprep.subr.mxu0 %v906_v32 }
  0x3f   : > { %268 = vadd.xlane.f32.xlu1 %v267_v20  ;;  %711 = vmatpush3.msra.mxu0 %v408_v40 }
  0x40   : > { %238 = vmax.xlane.f32.xlu0 %v237_v21  ;;  %712 = vmatprep.subr.mxu0 %v906_v32 }
  0x41   : > { %713 = vmatpush3.msra.mxu0 %v407_v41 }
  0x43   : > { %271 = vadd.xlane.f32.xlu1 %v270_v24 }
  0x44   : > { %241 = vmax.xlane.f32.xlu0 %v240_v25 }
  0x47   : > { %274 = vadd.xlane.f32.xlu1 %v273_v28 }
  0x48   : > { %244 = vmax.xlane.f32.xlu0 %v243_v29 }
  0x4b   : > { %250 = vmax.xlane.f32.xlu1 %v249_v30 }
  0x4c   : > { %247 = vmax.xlane.f32.xlu0 %v246_v31 }
  0xb8   : > { %v260_v42 = vpop.xlane.xlu1 %259 }
  0xb9   : > { %v254_v43 = vpop.xlane.xlu0 %253  ;;  %v278_v5 = vmul.f32 0.00390625, %v260_v42 }
  0xba   : > { %v276_v60 = vmul.f32 0.00390625, %v254_v43 }
  0xbb   : > { %v373_v18 = vrot.slane %v278_v5, %v309_v0 }
  0xbc   : > { %v230_v45 = vpop.xlane.xlu1 %229  ;;  %v364_v8 = vrot.slane %v276_v60, %v297_v59 }
  0xbd   : > { %v257_v46 = vpop.xlane.xlu0 %256  ;;  %v298_v27 = vrot.slane %v230_v45, %v297_v59 }
  0xbe   : > { %v277_v55 = vmul.f32 0.00390625, %v257_v46 }
  0xc0   : > { %v263_v48 = vpop.xlane.xlu1 %262  ;;  %v368_v1 = vrot.slane %v277_v55, %v302_v54  ;;  %v490_v55 = vld [vmem:[%s1135_s2] sm:$0xf] }
  0xc1   : > { %v233_v50 = vpop.xlane.xlu0 %232  ;;  %v279_v3 = vmul.f32 0.00390625, %v263_v48  ;;  %718 = vmatpush3.msk.msra.mxu1 %vm495_vm10, %v490_v55 }
  0xc2   : > { %v369_v14 = vsel %vm304_vm2, %v368_v1, %v364_v8  ;;  %v303_v20 = vrot.slane %v233_v50, %v302_v54  ;;  %v284_v50 = vld [vmem:[#allocation2] sm:$0x1] }
  0xc3   : > { %v378_v15 = vrot.slane %v279_v3, %v316_v2  ;;  %v374_v23 = vsel %vm311_vm3, %v373_v18, %v369_v14 }
  0xc4   : > { %v266_v52 = vpop.xlane.xlu1 %265  ;;  %v305_v34 = vsel %vm304_vm2, %v303_v20, %v298_v27 }
  0xc5   : > { %v236_v57 = vpop.xlane.xlu0 %235  ;;  %v280_v7 = vmul.f32 0.00390625, %v266_v52  ;;  %v379_v28 = vsel %vm318_vm4, %v378_v15, %v374_v23 }
  0xc6   : > { %v310_v24 = vrot.slane %v236_v57, %v309_v0 }
  0xc7   : > { %v383_v19 = vrot.slane %v280_v7, %v323_v6 }
  0xc8   : > { %v269_v62 = vpop.xlane.xlu1 %268  ;;  %v312_v39 = vsel %vm311_vm3, %v310_v24, %v305_v34 }
  0xc9   : > { %v239_v4 = vpop.xlane.xlu0 %238  ;;  %v281_v10 = vmul.f32 0.00390625, %v269_v62  ;;  %v384_v32 = vsel %vm325_vm5, %v383_v19, %v379_v28 }
  0xca   : > { %v317_v29 = vrot.slane %v239_v4, %v316_v2 }
  0xcb   : > { %v388_v21 = vrot.slane %v281_v10, %v330_v9 }
  0xcc   : > { %v272_v13 = vpop.xlane.xlu1 %271  ;;  %v319_v42 = vsel %vm318_vm4, %v317_v29, %v312_v39 }
  0xcd   : > { %v242_v16 = vpop.xlane.xlu0 %241  ;;  %v282_v17 = vmul.f32 0.00390625, %v272_v13  ;;  %v389_v35 = vsel %vm332_vm6, %v388_v21, %v384_v32 }
  0xce   : > { %v324_v33 = vrot.slane %v242_v16, %v323_v6 }
  0xcf   : > { %v393_v25 = vrot.slane %v282_v17, %v337_v12 }
  0xd0   : > { %v275_v26 = vpop.xlane.xlu1 %274  ;;  %v326_v46 = vsel %vm325_vm5, %v324_v33, %v319_v42 }
  0xd1   : > { %v245_v30 = vpop.xlane.xlu0 %244  ;;  %v283_v31 = vmul.f32 0.00390625, %v275_v26  ;;  %v394_v40 = vsel %vm339_vm7, %v393_v25, %v389_v35 }
  0xd2   : > { %v331_v36 = vrot.slane %v245_v30, %v330_v9 }
  0xd3   : > { %v398_v38 = vrot.slane %v283_v31, %v344_v22 }
  0xd4   : > { %v251_v41 = vpop.xlane.xlu1 %250  ;;  %v333_v49 = vsel %vm332_vm6, %v331_v36, %v326_v46 }
  0xd5   : > { %v399_v43 = vsel %vm346_vm8, %v398_v38, %v394_v40  ;;  %v248_v44 = vpop.xlane.xlu0 %247  ;;  %v345_v45 = vrot.slane %v251_v41, %v344_v22 }
  0xd6   : > { %v401_v47 = vadd.f32 %v399_v43, %v352_v37  ;;  %v338_v48 = vrot.slane %v248_v44, %v337_v12 }
  0xd8   : > { %402 = vst.msk [vmem:[#allocation2 + $0x1] sm:$0x1] %vm209_vm0, %v401_v47  ;;  %v340_v51 = vsel %vm339_vm7, %v338_v48, %v333_v49 }
  0xd9   : > { %v347_v52 = vsel %vm346_vm8, %v345_v45, %v340_v51 }
  0xda   : > { %v349_v53 = vmax.f32 %v284_v50, %v347_v52 }
  0xdc   : > { %351 = vst.msk [vmem:[#allocation2] sm:$0x1] %vm209_vm0, %v349_v53 }
  0xe3   : > { %v406_v54 = vld [vmem:[#allocation2] sm:$0x3] }
  0xe4   : > { %715 = vmatmul.mubr.msk.f32.vlgmr.msra.gmra.mxu0 %vm415_vm9, %v406_v54 }
 0x1a4   : > { %v485_v56 = vpop.f32.mrf.mxu0 }
 0x1a5   : > { %v489_v57 = vmax.f32 %v485_v56, 0.0 }
 0x1a6   : > { %v716_v58 = vpop.f32.mrf.mxu0 }
 0x1a7   : > { %720 = vmatmul.mubr.msk.f32.vlgmr.msra.gmra.mxu1 %vm491_vm11, %v489_v57 }
 0x267   : > { %v565_v59 = vpop.f32.mrf.mxu1 }
 0x268   : > { %v570_v60 = vrot.slane %v565_v59, 1 }
 0x269   : > { %v721_v61 = vpop.f32.mrf.mxu1 }
 0x26a   : > { %v572_v62 = vadd.f32 %v570_v60, %v565_v59 }
 0x26c   : > { %v682_v63 = vmul.f32 -1.442695, %v572_v62 }
 0x26e   : > { %789 = vpow2.f32 %v682_v63 }
 0x27b   : > { %v790_v0 = vpop.eup %789 }
 0x27c   : > { %v576_v1 = vadd.f32 1.0, %v790_v0 }
 0x27e   : > { %791 = vrcp.f32 %v576_v1 }
 0x28b   : > { %v792_v2 = vpop.eup %791 }
 0x28c   : > { %579 = vst.msk [vmem:[%s203_s7] sm:$0x1] %vm209_vm0, %v792_v2 }
 0x28d   : > { %834 = shalt.err (!%p831_p6)
}
 0x28e   : > { %s835_s23 = scalar_lea.hbm %s1090_s11, 16  ;;  %s839_s30 = scalar_lea.hbm %s1136_s3, 32 }
 0x28f   : > { %p836_p7 = scmp.ne.s32.totalorder %s1090_s11, %s835_s23  ;;  %p840_p13 = scmp.lt.s32.totalorder %s1090_s11, %s1136_s3 }
 0x290   : > { %p841_p2 = scmp.lt.s32.totalorder %s839_s30, %s835_s23 }
 0x291   : > { %p837_p10 = pnand %p836_p7, %p981_p9 }
 0x292   : > { %p842_p8 = por %p841_p2, %p840_p13 }
 0x293   : > { %p838_p4 = pneg %p837_p10 }
 0x295   : > { %p843_p12 = pnand %p842_p8, %p838_p4 }
 0x297   : > { %846 = shalt.err (!%p843_p12)
}
 0x298   : > { %724 = dma.vmem_to_hbm [thread:$0]  (%p981_p9), %s594_s8, 16, %s1090_s11, %s581_s18  }
 0x299 PF: > { %s605_s5 = sand.u32 1, %s881_s12   ;;  %p1142_p0 = scmp.ge.s32.totalorder %s901_s17, 2 }
 0x29a   : > { %s606_s6 = scalar_lea.sflag [#allocation5], %s605_s5 }
 0x29b   : > { %p731_p1 = pnand %p1142_p0, %p988_p11 }
 0x29d   : > { %p732_p3 = pneg %p731_p1 }
 0x29f   : > { %876 = dma.done.wait (%p732_p3), %s606_s6, 16  }
 0x2a0   : > { %878 = vsyncadd (%p732_p3), %s606_s6, 4294967280  ;;  %s19_s17 = sadd.s32 1, %s901_s17   ;;  %s1143_s12 = smov %s885_s13 }
 0x2a1   : > { %p16_p5 = scmp.ge.s32.totalorder %s19_s17, 4   ;;  %s1144_s13 = smov %s889_s14 }
 0x2a2   : > { %s1145_s14 = smov %s986_s26  ;;  %s1146_s15 = smov %s897_s16 }
 0x2a3   : > { %s1147_s16 = smov %s1149_s20  ;;  %18 = sbr.rel (!%p16_p5) target bundleno = 6 (0x6), region = 85 }
 0x2a8   :  { %610 = vsyncpa [#allocation4], 1 }
 0x2a9   :  { %612 = vsyncpa [#allocation4 + $0x1], 1 }
 0x2aa   :  { %613 = vsyncpa [#allocation5], 1 }
 0x2ab   :  { %615 = vsyncpa [#allocation5 + $0x1], 1 }

</bundles_post_ra>
